<compile_context>
chip_gen: v7x
topology: tpu7x:2x2x1
jax: 0.10.0
libtpu: 0.0.40
codegen_flags: <defaults>
</compile_context>

<pallas_src>
import jax
import jax.numpy as jnp
from jax.experimental import pallas as pl
from jax.experimental.pallas import tpu as pltpu


def make_user_inner_contrastive_loss(
    temperature: float,
    batch_size: int,
    hidden: int,
    *,
    tile_rows: int | None = None,
    num_cores: int = 2,                      # v7x has 2 TCs; harmless on v5e/v6e
    vmem_budget_bytes: int = 20 * 1024 * 1024,
):
    inv_t = 1.0 / float(temperature)
    inv_b = 1.0 / float(batch_size)

    def loss_fn(shared_i, specific_i, shared_j, specific_j):
        itemsize = jnp.dtype(shared_i.dtype).itemsize

        # --- pick the batch tile against the VMEM budget -------------------
        if tile_rows is not None:
            tb = int(tile_rows)
        else:
            # 4 inputs x 2 pipeline buffers per tile row.
            per_row_bytes = 4 * 2 * hidden * itemsize
            tb = max(8, (vmem_budget_bytes // per_row_bytes) // 8 * 8)
            tb = min(tb, 2048)
        if batch_size <= tb:
            tb = batch_size                   # full-dim block is always legal

        num_tiles = pl.cdiv(batch_size, tb)
        tiles_per_core = pl.cdiv(num_tiles, num_cores)

        def in_map(c, i):
            # Clamp phantom blocks (tiles that don't exist when num_tiles is
            # not a multiple of num_cores) back in bounds; their rows are
            # fully masked out inside the kernel.
            return (jnp.minimum(c * tiles_per_core + i, num_tiles - 1), 0)

        def kernel(si_ref, pi_ref, sj_ref, pj_ref, out_ref, acc_ref):
            c = pl.program_id(0)
            i = pl.program_id(1)

            @pl.when(i == 0)
            def _():
                acc_ref[...] = jnp.zeros_like(acc_ref)

            si = si_ref[...].astype(jnp.float32)
            pi = pi_ref[...].astype(jnp.float32)
            sj = sj_ref[...].astype(jnp.float32)
            pj = pj_ref[...].astype(jnp.float32)

            # Row-wise dot products == diagonals of the four (B, B) matmuls.
            pos = jnp.sum(si * sj, axis=-1, keepdims=True) * inv_t  # (tb, 1)
            n1 = jnp.sum(si * pj, axis=-1, keepdims=True) * inv_t
            n2 = jnp.sum(pi * sj, axis=-1, keepdims=True) * inv_t
            n3 = jnp.sum(pi * pj, axis=-1, keepdims=True) * inv_t

            # Mask rows past the true batch (ragged last tile / phantom tiles).
            row0 = (c * tiles_per_core + i) * tb
            rows = row0 + jax.lax.broadcasted_iota(jnp.int32, (tb, 1), 0)
            valid = rows < batch_size
            zero = jnp.zeros_like(pos)
            pos = jnp.where(valid, pos, zero)
            n1 = jnp.where(valid, n1, zero)
            n2 = jnp.where(valid, n2, zero)
            n3 = jnp.where(valid, n3, zero)

            # Stable cross-entropy with label 0: logsumexp([pos,n1,n2,n3]) - pos
            m = jnp.maximum(jnp.maximum(pos, n1), jnp.maximum(n2, n3))
            lse = m + jnp.log(
                jnp.exp(pos - m) + jnp.exp(n1 - m) + jnp.exp(n2 - m) + jnp.exp(n3 - m)
            )
            per_row = jnp.where(valid, lse - pos, zero)              # (tb, 1)

            acc_ref[...] += jnp.sum(per_row, axis=0, keepdims=True)  # (1, 1)

            @pl.when(i == pl.num_programs(1) - 1)
            def _():
                # Write this core's partial into element [0, 0] of its lane-dense
                # (8, 128) output block; everything else is zero.
                ri = jax.lax.broadcasted_iota(jnp.int32, (8, 128), 0)
                ci = jax.lax.broadcasted_iota(jnp.int32, (8, 128), 1)
                sel = ((ri == 0) & (ci == 0)).astype(jnp.float32)
                out_ref[...] = sel * acc_ref[...]

            del c  # (used above; keep linter quiet)

        cost = pl.CostEstimate(
            flops=8 * batch_size * hidden,            # 4 row-wise dots
            transcendentals=5 * batch_size,           # 4 exp + 1 log per row
            bytes_accessed=4 * batch_size * hidden * itemsize
            + num_cores * 8 * 128 * 4,
        )

        out = pl.pallas_call(
            kernel,
            out_shape=jax.ShapeDtypeStruct((num_cores * 8, 128), jnp.float32),
            grid_spec=pltpu.PrefetchScalarGridSpec(
                num_scalar_prefetch=0,
                grid=(num_cores, tiles_per_core),
                in_specs=[
                    pl.BlockSpec((tb, hidden), in_map),
                    pl.BlockSpec((tb, hidden), in_map),
                    pl.BlockSpec((tb, hidden), in_map),
                    pl.BlockSpec((tb, hidden), in_map),
                ],
                out_specs=pl.BlockSpec((8, 128), lambda c, i: (c, 0)),
                scratch_shapes=[pltpu.VMEM((1, 1), jnp.float32)],
            ),
            compiler_params=pltpu.CompilerParams(
                dimension_semantics=("parallel", "arbitrary"),
                vmem_limit_bytes=32 * 1024 * 1024,
            ),
            cost_estimate=cost,
        )(shared_i, specific_i, shared_j, specific_j)

        # Sum the per-core partials (only [0,0] of each block is nonzero) and
        # apply the 1/batch_size normalization of CrossEntropyLoss(sum)/B.
        return jnp.sum(out) * inv_b

    return loss_fn


def reference_loss(shared_i, specific_i, shared_j, specific_j, temperature):
    # Pure-JAX reference mirroring the PyTorch module. The module only uses the
    # diagonals of the four (B, B) matmuls, which are exactly row-wise dots.
    b = shared_i.shape[0]
    pos = jnp.sum(shared_i * shared_j, axis=1, keepdims=True) / temperature
    n1 = jnp.sum(shared_i * specific_j, axis=1, keepdims=True) / temperature
    n2 = jnp.sum(specific_i * shared_j, axis=1, keepdims=True) / temperature
    n3 = jnp.sum(specific_i * specific_j, axis=1, keepdims=True) / temperature
    logits = jnp.concatenate([pos, n1, n2, n3], axis=1)
    lse = jax.scipy.special.logsumexp(logits, axis=1)
    return jnp.sum(lse - logits[:, 0]) / b


if __name__ == "__main__":
    temperature = 0.5

    # ---- Test 1: f32, B not a multiple of the tile -> exercises the ragged
    # tail mask and the phantom-tile path of the 2-way core split. -----------
    B1, H1 = 20, 128
    k1, k2, k3, k4 = jax.random.split(jax.random.PRNGKey(0), 4)
    si = jax.random.normal(k1, (B1, H1), dtype=jnp.float32)
    pi = jax.random.normal(k2, (B1, H1), dtype=jnp.float32)
    sj = jax.random.normal(k3, (B1, H1), dtype=jnp.float32)
    pj = jax.random.normal(k4, (B1, H1), dtype=jnp.float32)

    loss_fn = make_user_inner_contrastive_loss(temperature, B1, H1, tile_rows=8)
    loss = loss_fn(si, pi, sj, pj)
    jax.block_until_ready(loss)
    ref = reference_loss(si, pi, sj, pj, temperature)
    assert jnp.allclose(loss, ref, rtol=1e-5, atol=1e-5), (loss, ref)

    # ---- Test 2: bf16 inputs (half the HBM traffic), f32 in-kernel accum. ---
    B2, H2 = 16, 128
    kb = jax.random.split(jax.random.PRNGKey(1), 4)
    si2 = jax.random.normal(kb[0], (B2, H2), dtype=jnp.float32).astype(jnp.bfloat16)
    pi2 = jax.random.normal(kb[1], (B2, H2), dtype=jnp.float32).astype(jnp.bfloat16)
    sj2 = jax.random.normal(kb[2], (B2, H2), dtype=jnp.float32).astype(jnp.bfloat16)
    pj2 = jax.random.normal(kb[3], (B2, H2), dtype=jnp.float32).astype(jnp.bfloat16)

    loss_fn2 = make_user_inner_contrastive_loss(temperature, B2, H2)
    loss2 = loss_fn2(si2, pi2, sj2, pj2)
    jax.block_until_ready(loss2)
    ref2 = reference_loss(
        si2.astype(jnp.float32), pi2.astype(jnp.float32),
        sj2.astype(jnp.float32), pj2.astype(jnp.float32), temperature,
    )
    assert jnp.allclose(loss2, ref2, rtol=1e-4, atol=1e-4), (loss2, ref2)

    print("KERNEL_OK")
</pallas_src>

<mosaic_0001>
module attributes {stable_mosaic.version = 11 : i64} {
  func.func @kernel(%arg0: i32, %arg1: i32, %arg2: memref<8x128xf32, #tpu.memory_space<vmem>>, %arg3: memref<8x128xf32, #tpu.memory_space<vmem>>, %arg4: memref<8x128xf32, #tpu.memory_space<vmem>>, %arg5: memref<8x128xf32, #tpu.memory_space<vmem>>, %arg6: memref<8x128xf32, #tpu.memory_space<vmem>>, %arg7: memref<1x1xf32, #tpu.memory_space<vmem>>) attributes {dimension_semantics = [#tpu.dimension_semantics<parallel>, #tpu.dimension_semantics<arbitrary>], iteration_bounds = array<i64: 2, 2>, scalar_prefetch = 0 : i64, scratch_operands = 1 : i64, tpu.core_type = #tpu.core_type<tc>, window_params = [{transform_indices = @transform_0, window_bounds = array<i64: 8, 128>}, {transform_indices = @transform_1, window_bounds = array<i64: 8, 128>}, {transform_indices = @transform_2, window_bounds = array<i64: 8, 128>}, {transform_indices = @transform_3, window_bounds = array<i64: 8, 128>}, {transform_indices = @transform_4, window_bounds = array<i64: 8, 128>}]} {
    %c0_i32 = arith.constant 0 : i32
    %0 = arith.cmpi eq, %arg1, %c0_i32 : i32
    %1 = arith.extui %0 : i1 to i32
    %c0_i32_0 = arith.constant 0 : i32
    %2 = arith.cmpi ne, %1, %c0_i32_0 : i32
    scf.if %2 {
      %cst_22 = arith.constant 0.000000e+00 : f32
      %66 = vector.broadcast %cst_22 : f32 to vector<1x1xf32>
      %c0_23 = arith.constant 0 : index
      %c0_24 = arith.constant 0 : index
      %67 = vector.load %arg7[%c0_23, %c0_24] : memref<1x1xf32, #tpu.memory_space<vmem>>, vector<1x1xf32>
      tpu.vector_store %arg7[%c0_23, %c0_24], %66 {strides = array<i32>} : memref<1x1xf32, #tpu.memory_space<vmem>>, vector<1x1xf32>,
    } else {
    }
    %c0 = arith.constant 0 : index
    %c0_1 = arith.constant 0 : index
    %3 = vector.load %arg2[%c0, %c0_1] : memref<8x128xf32, #tpu.memory_space<vmem>>, vector<8x128xf32>
    %c0_2 = arith.constant 0 : index
    %c0_3 = arith.constant 0 : index
    %4 = vector.load %arg3[%c0_2, %c0_3] : memref<8x128xf32, #tpu.memory_space<vmem>>, vector<8x128xf32>
    %c0_4 = arith.constant 0 : index
    %c0_5 = arith.constant 0 : index
    %5 = vector.load %arg4[%c0_4, %c0_5] : memref<8x128xf32, #tpu.memory_space<vmem>>, vector<8x128xf32>
    %c0_6 = arith.constant 0 : index
    %c0_7 = arith.constant 0 : index
    %6 = vector.load %arg5[%c0_6, %c0_7] : memref<8x128xf32, #tpu.memory_space<vmem>>, vector<8x128xf32>
    %7 = arith.mulf %3, %5 : vector<8x128xf32>
    %cst = arith.constant dense<0.000000e+00> : vector<8xf32>
    %8 = vector.multi_reduction <add>, %7, %cst [1] : vector<8x128xf32> to vector<8xf32>
    %9 = vector.shape_cast %8 : vector<8xf32> to vector<8x1xf32>
    %cst_8 = arith.constant 2.000000e+00 : f32
    %10 = vector.broadcast %cst_8 : f32 to vector<8x1xf32>
    %11 = arith.mulf %9, %10 : vector<8x1xf32>
    %12 = arith.mulf %3, %6 : vector<8x128xf32>
    %cst_9 = arith.constant dense<0.000000e+00> : vector<8xf32>
    %13 = vector.multi_reduction <add>, %12, %cst_9 [1] : vector<8x128xf32> to vector<8xf32>
    %14 = vector.shape_cast %13 : vector<8xf32> to vector<8x1xf32>
    %cst_10 = arith.constant 2.000000e+00 : f32
    %15 = vector.broadcast %cst_10 : f32 to vector<8x1xf32>
    %16 = arith.mulf %14, %15 : vector<8x1xf32>
    %17 = arith.mulf %4, %5 : vector<8x128xf32>
    %cst_11 = arith.constant dense<0.000000e+00> : vector<8xf32>
    %18 = vector.multi_reduction <add>, %17, %cst_11 [1] : vector<8x128xf32> to vector<8xf32>
    %19 = vector.shape_cast %18 : vector<8xf32> to vector<8x1xf32>
    %cst_12 = arith.constant 2.000000e+00 : f32
    %20 = vector.broadcast %cst_12 : f32 to vector<8x1xf32>
    %21 = arith.mulf %19, %20 : vector<8x1xf32>
    %22 = arith.mulf %4, %6 : vector<8x128xf32>
    %cst_13 = arith.constant dense<0.000000e+00> : vector<8xf32>
    %23 = vector.multi_reduction <add>, %22, %cst_13 [1] : vector<8x128xf32> to vector<8xf32>
    %24 = vector.shape_cast %23 : vector<8xf32> to vector<8x1xf32>
    %cst_14 = arith.constant 2.000000e+00 : f32
    %25 = vector.broadcast %cst_14 : f32 to vector<8x1xf32>
    %26 = arith.mulf %24, %25 : vector<8x1xf32>
    %c2_i32 = arith.constant 2 : i32
    %27 = arith.muli %arg0, %c2_i32 : i32
    %28 = arith.addi %27, %arg1 : i32
    %c8_i32 = arith.constant 8 : i32
    %29 = arith.muli %28, %c8_i32 : i32
    %30 = tpu.iota {dimensions = array<i32: 0>} : vector<8x1xi32>
    %31 = vector.broadcast %29 : i32 to vector<8x1xi32>
    %32 = arith.addi %31, %30 : vector<8x1xi32>
    %c20_i32 = arith.constant 20 : i32
    %33 = vector.broadcast %c20_i32 : i32 to vector<8x1xi32>
    %34 = arith.cmpi slt, %32, %33 : vector<8x1xi32>
    %cst_15 = arith.constant 0.000000e+00 : f32
    %35 = vector.broadcast %cst_15 : f32 to vector<8x1xf32>
    %36 = arith.select %34, %11, %35 : vector<8x1xi1>, vector<8x1xf32>
    %37 = arith.select %34, %16, %35 : vector<8x1xi1>, vector<8x1xf32>
    %38 = arith.select %34, %21, %35 : vector<8x1xi1>, vector<8x1xf32>
    %39 = arith.select %34, %26, %35 : vector<8x1xi1>, vector<8x1xf32>
    %40 = arith.maximumf %36, %37 : vector<8x1xf32>
    %41 = arith.maximumf %38, %39 : vector<8x1xf32>
    %42 = arith.maximumf %40, %41 : vector<8x1xf32>
    %43 = arith.subf %36, %42 : vector<8x1xf32>
    %44 = math.exp %43 : vector<8x1xf32>
    %45 = arith.subf %37, %42 : vector<8x1xf32>
    %46 = math.exp %45 : vector<8x1xf32>
    %47 = arith.addf %44, %46 : vector<8x1xf32>
    %48 = arith.subf %38, %42 : vector<8x1xf32>
    %49 = math.exp %48 : vector<8x1xf32>
    %50 = arith.addf %47, %49 : vector<8x1xf32>
    %51 = arith.subf %39, %42 : vector<8x1xf32>
    %52 = math.exp %51 : vector<8x1xf32>
    %53 = arith.addf %50, %52 : vector<8x1xf32>
    %54 = math.log %53 : vector<8x1xf32>
    %55 = arith.addf %42, %54 : vector<8x1xf32>
    %56 = arith.subf %55, %36 : vector<8x1xf32>
    %57 = arith.select %34, %56, %35 : vector<8x1xi1>, vector<8x1xf32>
    %c0_16 = arith.constant 0 : index
    %c0_17 = arith.constant 0 : index
    %58 = vector.load %arg7[%c0_16, %c0_17] : memref<1x1xf32, #tpu.memory_space<vmem>>, vector<1x1xf32>
    %cst_18 = arith.constant dense<0.000000e+00> : vector<1xf32>
    %59 = vector.multi_reduction <add>, %57, %cst_18 [0] : vector<8x1xf32> to vector<1xf32>
    %60 = vector.shape_cast %59 : vector<1xf32> to vector<1x1xf32>
    %61 = arith.addf %58, %60 : vector<1x1xf32>
    %c0_19 = arith.constant 0 : index
    %c0_20 = arith.constant 0 : index
    %62 = vector.load %arg7[%c0_19, %c0_20] : memref<1x1xf32, #tpu.memory_space<vmem>>, vector<1x1xf32>
    tpu.vector_store %arg7[%c0_19, %c0_20], %61 {strides = array<i32>} : memref<1x1xf32, #tpu.memory_space<vmem>>, vector<1x1xf32>,
    %c1_i32 = arith.constant 1 : i32
    %63 = arith.cmpi eq, %arg1, %c1_i32 : i32
    %64 = arith.extui %63 : i1 to i32
    %c0_i32_21 = arith.constant 0 : i32
    %65 = arith.cmpi ne, %64, %c0_i32_21 : i32
    scf.if %65 {
      %66 = tpu.iota {dimensions = array<i32: 0>} : vector<8x128xi32>
      %67 = tpu.iota {dimensions = array<i32: 1>} : vector<8x128xi32>
      %c0_i32_22 = arith.constant 0 : i32
      %68 = vector.broadcast %c0_i32_22 : i32 to vector<8x128xi32>
      %69 = arith.cmpi eq, %66, %68 : vector<8x128xi32>
      %c0_i32_23 = arith.constant 0 : i32
      %70 = vector.broadcast %c0_i32_23 : i32 to vector<8x128xi32>
      %71 = arith.cmpi eq, %67, %70 : vector<8x128xi32>
      %72 = arith.andi %69, %71 : vector<8x128xi1>
      %73 = arith.extui %72 : vector<8x128xi1> to vector<8x128xi32>
      %74 = arith.sitofp %73 : vector<8x128xi32> to vector<8x128xf32>
      %c0_24 = arith.constant 0 : index
      %c0_25 = arith.constant 0 : index
      %75 = vector.load %arg7[%c0_24, %c0_25] : memref<1x1xf32, #tpu.memory_space<vmem>>, vector<1x1xf32>
      %76 = vector.broadcast %75 : vector<1x1xf32> to vector<8x128xf32>
      %77 = arith.mulf %74, %76 : vector<8x128xf32>
      %c0_26 = arith.constant 0 : index
      %c0_27 = arith.constant 0 : index
      %78 = vector.load %arg6[%c0_26, %c0_27] : memref<8x128xf32, #tpu.memory_space<vmem>>, vector<8x128xf32>
      tpu.vector_store %arg6[%c0_26, %c0_27], %77 {strides = array<i32>} : memref<8x128xf32, #tpu.memory_space<vmem>>, vector<8x128xf32>,
    } else {
    }
    return
  }
  func.func @transform_0(%arg0: i32, %arg1: i32) -> (i32, i32) {
    %c2_i32 = arith.constant 2 : i32
    %0 = arith.muli %arg0, %c2_i32 : i32
    %1 = arith.addi %0, %arg1 : i32
    %c2_i32_0 = arith.constant 2 : i32
    %2 = arith.minsi %1, %c2_i32_0 : i32
    %c0_i32 = arith.constant 0 : i32
    %c0_i32_1 = arith.constant 0 : i32
    return %2, %c0_i32 : i32, i32
  }
  func.func @transform_1(%arg0: i32, %arg1: i32) -> (i32, i32) {
    %c2_i32 = arith.constant 2 : i32
    %0 = arith.muli %arg0, %c2_i32 : i32
    %1 = arith.addi %0, %arg1 : i32
    %c2_i32_0 = arith.constant 2 : i32
    %2 = arith.minsi %1, %c2_i32_0 : i32
    %c0_i32 = arith.constant 0 : i32
    %c0_i32_1 = arith.constant 0 : i32
    return %2, %c0_i32 : i32, i32
  }
  func.func @transform_2(%arg0: i32, %arg1: i32) -> (i32, i32) {
    %c2_i32 = arith.constant 2 : i32
    %0 = arith.muli %arg0, %c2_i32 : i32
    %1 = arith.addi %0, %arg1 : i32
    %c2_i32_0 = arith.constant 2 : i32
    %2 = arith.minsi %1, %c2_i32_0 : i32
    %c0_i32 = arith.constant 0 : i32
    %c0_i32_1 = arith.constant 0 : i32
    return %2, %c0_i32 : i32, i32
  }
  func.func @transform_3(%arg0: i32, %arg1: i32) -> (i32, i32) {
    %c2_i32 = arith.constant 2 : i32
    %0 = arith.muli %arg0, %c2_i32 : i32
    %1 = arith.addi %0, %arg1 : i32
    %c2_i32_0 = arith.constant 2 : i32
    %2 = arith.minsi %1, %c2_i32_0 : i32
    %c0_i32 = arith.constant 0 : i32
    %c0_i32_1 = arith.constant 0 : i32
    return %2, %c0_i32 : i32, i32
  }
  func.func @transform_4(%arg0: i32, %arg1: i32) -> (i32, i32) {
    %c0_i32 = arith.constant 0 : i32
    %c0_i32_0 = arith.constant 0 : i32
    return %arg0, %c0_i32 : i32, i32
  }
}

</mosaic_0001>

<bundles_post_ra>
// kernel: tpu_custom_call.1
= control target key start
LH: loop header
LB: loop body
LE: loop exit
PB: predicated region body
PF: predicated region fallthrough
CT: control target
= control target key end

     0   :  { %s1462_s0 = inlined_call_operand.hbm [shape: f32[20,128], index: 0, kind: input, shape index: {}]   ;;  %s1463_s1 = inlined_call_operand.hbm [shape: f32[20,128], index: 1, kind: input, shape index: {}]   ;;  %s1464_s2 = inlined_call_operand.hbm [shape: f32[20,128], index: 2, kind: input, shape index: {}]   ;;  %s1465_s3 = inlined_call_operand.hbm [shape: f32[20,128], index: 3, kind: input, shape index: {}]   ;;  %s1466_s4 = inlined_call_operand.hbm [shape: f32[16,128], index: 4, kind: output, shape index: {}]  }
   0x1   :  { %1479 = sst [smem:[#allocation26_spill]] %s1463_s1 }
   0x2   :  { %9 = vsyncpa [#allocation4], 0 }
   0x3   :  { %11 = vsyncpa [#allocation4 + $0x1], 0 }
   0x4   :  { %12 = vsyncpa [#allocation7], 0 }
   0x5   :  { %14 = vsyncpa [#allocation7 + $0x1], 0 }
   0x6   :  { %15 = vsyncpa [#allocation10], 0 }
   0x7   :  { %17 = vsyncpa [#allocation10 + $0x1], 0 }
   0x8   :  { %18 = vsyncpa [#allocation5], 0 }
   0x9   :  { %20 = vsyncpa [#allocation5 + $0x1], 0  ;;  %s1108_s15 = smov 0   ;;  %s1110_s16 = smov 0  }
   0xa   :  { %s1112_s17 = smov 0   ;;  %s1114_s18 = smov 0  }
   0xb   :  { %s1116_s19 = smov 0   ;;  %s1118_s20 = smov 0  }
   0xc   :  { %s1120_s21 = smov 0   ;;  %s1122_s22 = smov 0  }
   0xd   :  { %s1124_s23 = smov 0   ;;  %s1126_s24 = smov 0  }
   0xe   :  { %s1128_s25 = smov 0  }
   0xf LB: > { %1480 = sst [smem:[#allocation16_spill]] %s1033_s15  ;;  %s1164_s26 = sadd.s32 4294967295, %s1073_s25   ;;  %s1073_s25 = sphi %s1128_s25, %s26_s25   ;;  %s1069_s24 = sphi %s1126_s24, %s1515_s24   ;;  %s1065_s23 = sphi %s1124_s23, %s1514_s23   ;;  %s1061_s22 = sphi %s1122_s22, %s1513_s22   ;;  %s1057_s21 = sphi %s1120_s21, %s1512_s21   ;;  %s1053_s20 = sphi %s1118_s20, %s1511_s20   ;;  %s1049_s19 = sphi %s1116_s19, %s1519_s19   ;;  %s1045_s18 = sphi %s1114_s18, %s1518_s18   ;;  %s1041_s17 = sphi %s1112_s17, %s1509_s17   ;;  %s1037_s16 = sphi %s1110_s16, %s1517_s16   ;;  %s1033_s15 = sphi %s1108_s15, %s1516_s15  }
  0x10   : > { %1481 = sst [smem:[#allocation17_spill]] %s1041_s17  ;;  %s653_s27 = sadd.s32 4294967294, %s1073_s25  }
  0x11   : > { %1482 = sst [smem:[#allocation18_spill]] %s1053_s20  ;;  %s35_s28 = sadd.s32 1, %s1065_s23 }
  0x12   : > { %1483 = sst [smem:[#allocation19_spill]] %s1065_s23  ;;  %s38_s29 = sadd.s32 1, %s1069_s24 }
  0x13   : > { %1484 = sst [smem:[#allocation20_spill]] %s1069_s24  ;;  %p36_p0 = scmp.ge.s32.totalorder %s35_s28, 2 }
  0x14   : > { %s654_s30 = sshll.u32 %s1069_s24, 1  ;;  %s53_s6 = sadd.s32 1, %s1053_s20 }
  0x15   : > { %s43_s5 = sadd.s32 %s1065_s23, %s654_s30  ;;  %s1521_s28 = smov (%p36_p0, %s35_s28), 0 }
  0x16   : > { %1485 = sst [smem:[#allocation21_spill]] %s1521_s28  ;;  %s1523_s29 = smov (!%p36_p0, %s38_s29), %s1069_s24 }
  0x17   : > { %p44_p1 = scmp.lt.s32.totalorder %s43_s5, 2  ;;  %p60_p2 = scmp.ne.s32.totalorder %s1053_s20, %s1049_s19 }
  0x18   : > { %p40_p3 = scmp.ge.s32.totalorder %s1523_s29, 2  ;;  %p61_p4 = scmp.eq.s32.totalorder %s1073_s25, 0 }
  0x19   : > { %s1525_s5 = smov (!%p44_p1, %s43_s5), 2  ;;  %p66_p6 = scmp.ne.s32.totalorder %s1049_s19, %s1045_s18 }
  0x1a   : > { %s1527_s29 = smov (%p40_p3, %s1523_s29), 0  ;;  %p1180_p5 = por %p61_p4, %p60_p2 }
  0x1b   : > { %1486 = sst [smem:[#allocation22_spill]] %s1527_s29  ;;  %s655_s8 = sshll.u32 %s1527_s29, 1 }
  0x1c   : > { %p67_p7 = scmp.eq.s32.totalorder %s1164_s26, 0  ;;  %s47_s9 = sadd.s32 %s655_s8, %s1521_s28 }
  0x1d   : > { %s178_s10 = ssub.s32 %s1069_s24, %s1527_s29  ;;  %p48_p8 = scmp.lt.s32.totalorder %s47_s9, 2 }
  0x1e   : > { %p1191_p9 = por %p67_p7, %p66_p6  ;;  %p179_p10 = scmp.eq.s32.totalorder %s178_s10, 0 }
  0x1f   : > { %s181_s12 = sadd.s32 1, %s1041_s17  ;;  %s1529_s9 = smov (!%p48_p8, %s47_s9), 2 }
  0x20   : > { %s1488_s11 = scalar_select %p1191_p9, 1, 0 }
  0x21   : > { %s1197_s13 = scalar_select %p179_p10, %s1041_s17, %s181_s12  }
  0x22   : > { %s50_s14 = ssub.s32 %s1525_s5, %s1529_s9  ;;  %p191_p11 = scmp.ne.s32.totalorder %s1041_s17, %s1037_s16 }
  0x23   : > { %1489 = sst [smem:[#allocation23_spill]] %s1197_s13  ;;  %p51_p12 = scmp.eq.s32.totalorder %s50_s14, 0 }
  0x24   : > { %p192_p13 = scmp.eq.s32.totalorder %s1164_s26, 3  ;;  %p197_p0 = scmp.ne.s32.totalorder %s1037_s16, %s1033_s15 }
  0x25   : > { %p198_p1 = scmp.eq.s32.totalorder %s653_s27, 3  ;;  %p719_p4 = scmp.lt.s32.totalorder %s1073_s25, 4 }
  0x26   : > { %s1207_s18 = scalar_select %p51_p12, %s1053_s20, %s53_s6  }
  0x27   : > { %p1209_p2 = por %p192_p13, %p191_p11  ;;  %p1213_p3 = por %p198_p1, %p197_p0 }
  0x28   : > { %1490 = sst [smem:[#allocation24_spill]] %s1207_s18  ;;  %s1219_s10 = sand.u32 1, %s1053_s20  }
  0x29   : > { %s1491_s30 = scalar_select %p1209_p2, 1, 0 }
  0x2a   : > { %s1492_s8 = scalar_select %p1213_p3, 1, 0 }
  0x2b   : > { %s1221_s9 = sshll.u32 %s1525_s5, 7  ;;  %s1224_s12 = sshll.u32 %s1219_s10, 3 }
  0x2c   : > { %1493 = sst [smem:[#allocation25_spill]] %s1492_s8  ;;  %p1228_p6 = pnand %p719_p4, %p1180_p5 }
  0x2d   : > { %s240_s6 = sand.u32 1, %s1073_s25   ;;  %s1495_s1 = sld [smem:[#allocation26_spill]] }
  0x2e   : > { %s1494_s27 = scalar_select %p1228_p6, 1, 0 }
  0x2f   : > { %s244_s5 = scalar_lea.vmem [#allocation6], %s1224_s12  ;;  %s1243_s7 = scalar_lea.sflag [#allocation7], %s240_s6 }
  0x30   : > { %s255_s24 = sshll.u32 %s244_s5, 4  ;;  %p1249_p8 = pneg %p1228_p6  ;;  %s1240_s24 = int_to_ptr.vmem [resolvable:$true] %s255_s24 }
  0x33   : > { %s1237_s28 = scalar_lea.hbm %s1495_s1, %s1221_s9  ;;  %s828_s5 = scalar_lea.hbm %s1495_s1, 384 }
  0x34   : > { %s823_s23 = scalar_lea.hbm %s1237_s28, 128  ;;  %p829_p12 = scmp.lt.u32.totalorder %s1237_s28, %s1495_s1 }
  0x35   : > { %p824_p5 = scmp.ne.s32.totalorder %s1237_s28, %s823_s23  ;;  %p830_p13 = scmp.lt.u32.totalorder %s828_s5, %s823_s23 }
  0x36   : > { %p832_p1 = scmp.lt.u32.totalorder %s823_s23, %s1237_s28 }
  0x37   : > { %p826_p10 = pnand %p1249_p8, %p824_p5  ;;  %p831_p0 = por %p830_p13, %p829_p12 }
  0x39   : > { %p827_p11 = pneg %p826_p10  ;;  %p833_p4 = por %p832_p1, %p831_p0 }
  0x3b   : > { %p834_p7 = pnand %p833_p4, %p827_p11 }
  0x3d   : > { %837 = shalt.err (!%p834_p7)
}
  0x3e   : > { %s838_s6 = scalar_lea.vmem %s1240_s24, 128  ;;  %s1075_s29 = smov [#allocation6]  }
  0x3f   : > { %p839_p5 = scmp.ne.s32.totalorder %s1240_s24, %s838_s6  ;;  %s843_s14 = sshll.u32 %s1075_s29, 4  ;;  %s844_s14 = int_to_ptr.vmem [resolvable:$false] %s843_s14 }
  0x40   : > { %s845_s20 = scalar_lea.vmem %s844_s14, 256  ;;  %p846_p2 = scmp.lt.s32.totalorder %s1240_s24, %s844_s14 }
  0x41   : > { %p841_p10 = pnand %p839_p5, %p1249_p8  ;;  %p847_p9 = scmp.lt.s32.totalorder %s845_s20, %s838_s6 }
  0x43   : > { %p842_p3 = pneg %p841_p10  ;;  %p848_p12 = por %p847_p9, %p846_p2 }
  0x45   : > { %p849_p13 = pnand %p848_p12, %p842_p3 }
  0x47   : > { %852 = shalt.err (!%p849_p13)
}
  0x48   : > { %708 = dma.hbm_to_vmem [thread:$0]  (!%p1228_p6), %s1237_s28, 128, %s1240_s24, %s1243_s7  }
  0x49   : > { %p304_p7 = scmp.lt.s32.totalorder %s1073_s25, 5  ;;  %p1497_p11 = scmp.ge.s32.totalorder %s1073_s25, 1 }
  0x4a   : > { %s1284_s6 = scalar_lea.hbm %s1462_s0, %s1221_s9  ;;  %s222_s29 = scalar_lea.vmem [#allocation3], %s1224_s12 }
  0x4b   : > { %p1276_p0 = pnand %p1497_p11, %p304_p7  ;;  %s233_s14 = sshll.u32 %s222_s29, 4  ;;  %s234_s14 = int_to_ptr.vmem [resolvable:$true] %s233_s14 }
  0x4c   : > { %s219_s20 = scalar_lea.sflag [#allocation4], %s1219_s10  ;;  %s853_s24 = scalar_lea.hbm %s1284_s6, 128 }
  0x4d   : > { %s1498_s23 = scalar_select %p1276_p0, 1, 0 }
  0x4e   : > { %p854_p9 = scmp.ne.s32.totalorder %s1284_s6, %s853_s24  ;;  %s858_s17 = scalar_lea.hbm %s1462_s0, 384 }
  0x4f   : > { %p859_p1 = scmp.lt.u32.totalorder %s1284_s6, %s1462_s0  ;;  %p860_p4 = scmp.lt.u32.totalorder %s858_s17, %s853_s24 }
  0x50   : > { %p856_p2 = pnand %p854_p9, %p1249_p8  ;;  %p862_p10 = scmp.lt.u32.totalorder %s853_s24, %s1284_s6 }
  0x51   : > { %p861_p5 = por %p860_p4, %p859_p1 }
  0x52   : > { %p857_p3 = pneg %p856_p2 }
  0x53   : > { %p863_p12 = por %p862_p10, %p861_p5 }
  0x55   : > { %p864_p13 = pnand %p863_p12, %p857_p3 }
  0x57   : > { %867 = shalt.err (!%p864_p13)
}
  0x58   : > { %s868_s29 = scalar_lea.vmem %s234_s14, 128  ;;  %s1076_s8 = smov [#allocation3]  }
  0x59   : > { %p869_p7 = scmp.ne.s32.totalorder %s234_s14, %s868_s29  ;;  %s873_s15 = sshll.u32 %s1076_s8, 4  ;;  %s874_s15 = int_to_ptr.vmem [resolvable:$false] %s873_s15 }
  0x5a   : > { %s875_s1 = scalar_lea.vmem %s874_s15, 256  ;;  %p876_p2 = scmp.lt.s32.totalorder %s234_s14, %s874_s15 }
  0x5b   : > { %p871_p11 = pnand %p869_p7, %p1249_p8  ;;  %p877_p0 = scmp.lt.s32.totalorder %s875_s1, %s868_s29 }
  0x5d   : > { %p872_p9 = pneg %p871_p11  ;;  %p878_p6 = por %p877_p0, %p876_p2 }
  0x5f   : > { %p879_p1 = pnand %p878_p6, %p872_p9 }
  0x61   : > { %882 = shalt.err (!%p879_p1)
}
  0x62   : > { %p1499_p4 = scmp.ne.s32.totalorder %s1494_s27, 0  ;;  %s1309_s28 = scalar_lea.hbm %s1464_s2, %s1221_s9 }
  0x63   : > { %s266_s15 = scalar_lea.vmem [#allocation8], %s1224_s12  ;;  %s883_s13 = scalar_lea.hbm %s1309_s28, 128 }
  0x64   : > { %705 = dma.hbm_to_vmem [thread:$0]  (!%p1499_p4), %s1284_s6, 128, %s234_s14, %s219_s20  }
  0x65   : > { %s277_s8 = sshll.u32 %s266_s15, 4  ;;  %p884_p6 = scmp.ne.s32.totalorder %s1309_s28, %s883_s13  ;;  %s278_s8 = int_to_ptr.vmem [resolvable:$true] %s277_s8 }
  0x66   : > { %s888_s6 = scalar_lea.hbm %s1464_s2, 384  ;;  %p889_p5 = scmp.lt.u32.totalorder %s1309_s28, %s1464_s2 }
  0x67   : > { %p886_p0 = pnand %p884_p6, %p1249_p8  ;;  %p890_p10 = scmp.lt.u32.totalorder %s888_s6, %s883_s13 }
  0x68   : > { %p892_p13 = scmp.lt.u32.totalorder %s883_s13, %s1309_s28 }
  0x69   : > { %p887_p3 = pneg %p886_p0  ;;  %p891_p12 = por %p890_p10, %p889_p5 }
  0x6b   : > { %p893_p7 = por %p892_p13, %p891_p12 }
  0x6d   : > { %p894_p11 = pnand %p893_p7, %p887_p3 }
  0x6f   : > { %897 = shalt.err (!%p894_p11)
}
  0x70   : > { %s898_s1 = scalar_lea.vmem %s278_s8, 128  ;;  %s1077_s17 = smov [#allocation8]  }
  0x71   : > { %p899_p9 = scmp.ne.s32.totalorder %s278_s8, %s898_s1  ;;  %s903_s24 = sshll.u32 %s1077_s17, 4  ;;  %s904_s24 = int_to_ptr.vmem [resolvable:$false] %s903_s24 }
  0x72   : > { %s905_s15 = scalar_lea.vmem %s904_s24, 256  ;;  %p906_p6 = scmp.lt.s32.totalorder %s278_s8, %s904_s24 }
  0x73   : > { %p901_p2 = pnand %p899_p9, %p1249_p8  ;;  %p907_p0 = scmp.lt.s32.totalorder %s905_s15, %s898_s1 }
  0x75   : > { %p902_p1 = pneg %p901_p2  ;;  %p908_p4 = por %p907_p0, %p906_p6 }
  0x77   : > { %p909_p5 = pnand %p908_p4, %p902_p1 }
  0x79   : > { %912 = shalt.err (!%p909_p5)
}
  0x7a   : > { %p1500_p10 = scmp.ne.s32.totalorder %s1494_s27, 0  ;;  %s1334_s29 = scalar_lea.hbm %s1465_s3, %s1221_s9 }
  0x7b   : > { %s288_s6 = scalar_lea.vmem [#allocation9], %s1224_s12  ;;  %s285_s20 = scalar_lea.sflag [#allocation10], %s1219_s10 }
  0x7c   : > { %711 = dma.hbm_to_vmem [thread:$0]  (!%p1500_p10), %s1309_s28, 128, %s278_s8, %s1243_s7  }
  0x7d   : > { %s299_s14 = sshll.u32 %s288_s6, 4  ;;  %s913_s1 = scalar_lea.hbm %s1334_s29, 128  ;;  %s300_s14 = int_to_ptr.vmem [resolvable:$true] %s299_s14 }
  0x7e   : > { %p914_p4 = scmp.ne.s32.totalorder %s1334_s29, %s913_s1  ;;  %s918_s28 = scalar_lea.hbm %s1465_s3, 384 }
  0x7f   : > { %p919_p13 = scmp.lt.u32.totalorder %s1334_s29, %s1465_s3  ;;  %p920_p7 = scmp.lt.u32.totalorder %s918_s28, %s913_s1 }
  0x80   : > { %p916_p3 = pnand %p914_p4, %p1249_p8  ;;  %p922_p9 = scmp.lt.u32.totalorder %s913_s1, %s1334_s29 }
  0x81   : > { %p921_p11 = por %p920_p7, %p919_p13 }
  0x82   : > { %p917_p12 = pneg %p916_p3 }
  0x83   : > { %p923_p2 = por %p922_p9, %p921_p11 }
  0x85   : > { %p924_p1 = pnand %p923_p2, %p917_p12 }
  0x87   : > { %927 = shalt.err (!%p924_p1)
}
  0x88   : > { %s928_s10 = scalar_lea.vmem %s300_s14, 128  ;;  %s1078_s12 = smov [#allocation9]  }
  0x89   : > { %p929_p6 = scmp.ne.s32.totalorder %s300_s14, %s928_s10  ;;  %s933_s24 = sshll.u32 %s1078_s12, 4  ;;  %s934_s24 = int_to_ptr.vmem [resolvable:$false] %s933_s24 }
  0x8a   : > { %s935_s15 = scalar_lea.vmem %s934_s24, 256  ;;  %p936_p4 = scmp.lt.s32.totalorder %s300_s14, %s934_s24 }
  0x8b   : > { %p931_p0 = pnand %p929_p6, %p1249_p8  ;;  %p937_p3 = scmp.lt.s32.totalorder %s935_s15, %s928_s10 }
  0x8d   : > { %p932_p5 = pneg %p931_p0  ;;  %p938_p10 = por %p937_p3, %p936_p4 }
  0x8f   : > { %p939_p7 = pnand %p938_p10, %p932_p5 }
  0x91   : > { %942 = shalt.err (!%p939_p7)
}
  0x92   : > { %p1501_p13 = scmp.ne.s32.totalorder %s1494_s27, 0  ;;  %p1502_p12 = scmp.ne.s32.totalorder %s1498_s23, 0 }
  0x93   : > { %s310_s18 = sand.u32 (!%p1502_p12), 1, %s1049_s19   ;;  %p1503_p8 = scmp.ne.s32.totalorder (!%p1502_p12), %s1488_s11, 0 }
  0x94   : > { %714 = dma.hbm_to_vmem [thread:$0]  (!%p1501_p13), %s1334_s29, 128, %s300_s14, %s285_s20  }
  0x95   : > { %308 = sbr.rel (%p1502_p12) target bundleno = 547 (0x223), region = 36  ;;  %s1358_s13 = sshll.u32 (!%p1502_p12), %s310_s18, 3 }
  0x96   : > { %s311_s5 = scalar_lea.sflag (!%p1502_p12), [#allocation4], %s310_s18  ;;  %s314_s6 = scalar_lea.vmem (!%p1502_p12), [#allocation3], %s1358_s13 }
  0x9c   : > { %1016 = dma.done.wait (%p1503_p8), %s311_s5, 128  }
  0x9d   : > { %1018 = vsyncadd (%p1503_p8), %s311_s5, 4294967168  ;;  %s319_s27 = sand.u32 1, %s1164_s26   ;;  %s323_s23 = scalar_lea.vmem [#allocation6], %s1358_s13 }
  0x9e   : > { %s320_s29 = scalar_lea.sflag [#allocation7], %s319_s27 }
  0x9f   : > { %1020 = dma.done.wait (%p1503_p8), %s320_s29, 256  }
  0xa0   : > { %1022 = vsyncadd (%p1503_p8), %s320_s29, 4294967040  ;;  %s332_s14 = scalar_lea.vmem [#allocation8], %s1358_s13  ;;  %s338_s20 = scalar_lea.sflag [#allocation10], %s310_s18 }
  0xa1   : > { %s341_s1 = scalar_lea.vmem [#allocation9], %s1358_s13 }
  0xa2   : > { %1024 = dma.done.wait (%p1503_p8), %s338_s20, 128  }
  0xa3   : > { %1026 = vsyncadd (%p1503_p8), %s338_s20, 4294967168  ;;  %s378_s26 = sand.u32 1, %s1037_s16   ;;  %p682_p10 = scmp.ne.s32.totalorder %s1057_s21, 0 }
  0xa4   : > { %s1380_s17 = sshll.u32 %s378_s26, 3  ;;  %vm401_vm0 = vcmask (!%p682_p10), 0   ;;  %v1079_v0 = vmov (!%p682_p10), 0.0  }
  0xa5   : > { %s380_s7 = scalar_lea.vmem [#allocation11], %s1380_s17  ;;  %400 = sbr.rel (%p682_p10) target bundleno = 172 (0xac), region = 56  ;;  %402 = vst.msk [vmem:[#allocation2] sm:$0x1] (!%p682_p10), %vm401_vm0, %v1079_v0 }
  0xac PF: > { %v404_v1 = vld [vmem:[%s323_s23] sm:$0xff]  ;;  %v405_v2 = vld [vmem:[%s332_s14] sm:$0xff]  ;;  %s683_s11 = sshll.u32 %s1061_s22, 1  ;;  %v426_v9 = vlaneseq  ;;  %vm466_vm2 = vcmask 0   ;;  %p685_p11 = scmp.ne.s32.totalorder %s1057_s21, 1 }
  0xad   : > { %v403_v3 = vld [vmem:[%s314_s6] sm:$0xff]  ;;  %v415_v4 = vmul.f32 %v405_v2, %v404_v1  ;;  %v406_v6 = vld [vmem:[%s341_s1] sm:$0xff]  ;;  %s424_s28 = sadd.s32 %s1057_s21, %s683_s11  ;;  %v1080_v57 = vmov (!%p685_p11), 0   ;;  %v1081_v59 = vmov (!%p685_p11), 0.0  }
  0xae   : > { %v407_v5 = vmul.f32 %v405_v2, %v403_v3  ;;  %v419_v7 = vmul.f32 %v406_v6, %v404_v1  ;;  %v411_v8 = vmul.f32 %v406_v6, %v403_v3  ;;  %s684_s8 = sshll.u32 %s424_s28, 3  ;;  %v1386_v10 = vshrl.u32 %v426_v9, 7  ;;  %v458_v53 = vld [vmem:[#allocation2] sm:$0x1]  ;;  %822 = vset.pattern.permute.xlu0 (!%p685_p11), %v1080_v57 }
  0xaf   : > { %416 = vadd.xlane.f32.xlu1 %v415_v4  ;;  %v428_v11 = vstv %s684_s8  ;;  %v473_v58 = vand.u32 (!%p685_p11), 127, %v426_v9 }
  0xb0   : > { %408 = vadd.xlane.f32.xlu0 %v407_v5  ;;  %v429_v12 = vadd.s32 %v428_v11, %v1386_v10  ;;  %vm474_vm3 = vcmp.eq.s32.totalorder (!%p685_p11), %v1386_v10, 0 }
  0xb1   : > { %vm475_vm4 = vcmp.eq.s32.totalorder (!%p685_p11), %v473_v58, 0 }
  0xb2   : > { %vm430_vm1 = vcmp.lt.s32.totalorder %v429_v12, 20  ;;  %vm476_vm5 = vmand (!%p685_p11), %vm474_vm3, %vm475_vm4 }
  0xb3   : > { %420 = vadd.xlane.f32.xlu1 %v419_v7  ;;  %v686_v60 = vsel (!%p685_p11), %vm476_vm5, 1.0, %v1081_v59 }
  0xb4   : > { %412 = vadd.xlane.f32.xlu0 %v411_v8 }
 0x13c   : > { %v417_v13 = vpop.xlane.xlu1 %416 }
 0x13d   : > { %v409_v14 = vpop.xlane.xlu0 %408  ;;  %v418_v15 = vmul.f32 2.0, %v417_v13 }
 0x13e   : > { %v410_v16 = vmul.f32 2.0, %v409_v14 }
 0x13f   : > { %v433_v21 = vsel %vm430_vm1, %v418_v15, 0.0 }
 0x140   : > { %v421_v17 = vpop.xlane.xlu1 %420  ;;  %v431_v22 = vsel %vm430_vm1, %v410_v16, 0.0 }
 0x141   : > { %v413_v18 = vpop.xlane.xlu0 %412  ;;  %v422_v19 = vmul.f32 2.0, %v421_v17 }
 0x142   : > { %v414_v20 = vmul.f32 2.0, %v413_v18 }
 0x143   : > { %v434_v23 = vsel %vm430_vm1, %v422_v19, 0.0 }
 0x144   : > { %v432_v24 = vsel %vm430_vm1, %v414_v20, 0.0  ;;  %v436_v25 = vmax.f32 %v433_v21, %v434_v23 }
 0x145   : > { %v435_v26 = vmax.f32 %v431_v22, %v432_v24 }
 0x147   : > { %v437_v27 = vmax.f32 %v435_v26, %v436_v25 }
 0x149   : > { %v438_v28 = vsub.f32 %v431_v22, %v437_v27  ;;  %v441_v29 = vsub.f32 %v432_v24, %v437_v27  ;;  %v445_v30 = vsub.f32 %v433_v21, %v437_v27  ;;  %v449_v31 = vsub.f32 %v434_v23, %v437_v27 }
 0x14b   : > { %v439_v32 = vmul.f32 1.442695, %v438_v28  ;;  %v442_v33 = vmul.f32 1.442695, %v441_v29  ;;  %v446_v34 = vmul.f32 1.442695, %v445_v30 }
 0x14c   : > { %v450_v35 = vmul.f32 1.442695, %v449_v31 }
 0x14d   : > { %812 = vpow2.f32 %v439_v32 }
 0x14e   : > { %814 = vpow2.f32 %v442_v33 }
 0x14f   : > { %816 = vpow2.f32 %v446_v34 }
 0x150   : > { %818 = vpow2.f32 %v450_v35 }
 0x157   : > { %v813_v36 = vpop.eup %812 }
 0x158   : > { %v815_v37 = vpop.eup %814 }
 0x159   : > { %v444_v38 = vadd.f32 %v815_v37, %v813_v36  ;;  %v817_v39 = vpop.eup %816 }
 0x15a   : > { %v819_v41 = vpop.eup %818 }
 0x15b   : > { %v448_v40 = vadd.f32 %v817_v39, %v444_v38 }
 0x15d   : > { %v452_v42 = vadd.f32 %v819_v41, %v448_v40 }
 0x15f   : > { %820 = vlog2.f32 %v452_v42 }
 0x169   : > { %v821_v43 = vpop.eup %820 }
 0x16a   : > { %v454_v44 = vmul.f32 0.6931472, %v821_v43 }
 0x16c   : > { %v455_v45 = vadd.f32 %v454_v44, %v437_v27 }
 0x16e   : > { %v456_v46 = vsub.f32 %v455_v45, %v431_v22 }
 0x170   : > { %v457_v47 = vsel %vm430_vm1, %v456_v46, 0.0 }
 0x171   : > { %v459_v48 = vrot.slane %v457_v47, 4 }
 0x173   : > { %v460_v49 = vadd.f32 %v459_v48, %v457_v47 }
 0x175   : > { %v461_v50 = vrot.slane %v460_v49, 2 }
 0x177   : > { %v462_v51 = vadd.f32 %v461_v50, %v460_v49 }
 0x179   : > { %v463_v52 = vrot.slane %v462_v51, 1  ;;  %471 = sbr.rel (%p685_p11) target bundleno = 522 (0x20a), region = 60 }
 0x17b   : > { %v464_v54 = vadd.f32 %v463_v52, %v462_v51 }
 0x17d   : > { %v465_v55 = vadd.f32 %v464_v54, %v458_v53 }
 0x17f   : > { %467 = vst.msk [vmem:[#allocation2] sm:$0x1] %vm466_vm2, %v465_v55 }
 0x186   : > { %v687_v56 = vld [vmem:[#allocation2] ss:$0 sm:$0xff] }
 0x187   : > { %486 = vperm.xlu0 %822, %v687_v56  }
 0x206   : > { %v487_v61 = vpop.permute.xlu0 %486 }
 0x207   : > { %v489_v62 = vmul.f32 %v686_v60, %v487_v61 }
 0x209   : > { %490 = vst [vmem:[%s380_s7] sm:$0xff] %v489_v62 }
 0x20a PF: > { %s689_s21 = sshll.u32 %s1061_s22, 7  ;;  %s505_s24 = sshll.u32 %s380_s7, 4  ;;  %s506_s24 = int_to_ptr.vmem [resolvable:$true] %s505_s24 }
 0x20b   : > { %s1402_s12 = scalar_lea.hbm %s1466_s4, %s689_s21  ;;  %s492_s15 = scalar_lea.sflag [#allocation5], %s378_s26 }
 0x20c   : > { %s943_s18 = scalar_lea.vmem %s506_s24, 128  ;;  %p1504_p2 = scmp.ne.s32.totalorder %s1491_s30, 0 }
 0x20d   : > { %p944_p9 = scmp.ne.s32.totalorder %s506_s24, %s943_s18  ;;  %s1082_s13 = smov [#allocation11]  }
 0x20e   : > { %s947_s5 = sshll.u32 %s1082_s13, 4  ;;  %s948_s5 = int_to_ptr.vmem [resolvable:$false] %s947_s5 }
 0x20f   : > { %p945_p1 = pnand %p944_p9, %p1504_p2  ;;  %s949_s6 = scalar_lea.vmem %s948_s5, 256 }
 0x210   : > { %p950_p0 = scmp.lt.s32.totalorder %s506_s24, %s948_s5  ;;  %p951_p5 = scmp.lt.s32.totalorder %s949_s6, %s943_s18 }
 0x211   : > { %p946_p6 = pneg %p945_p1 }
 0x212   : > { %p952_p4 = por %p951_p5, %p950_p0 }
 0x214   : > { %p953_p3 = pnand %p952_p4, %p946_p6 }
 0x216   : > { %956 = shalt.err (!%p953_p3)
}
 0x217   : > { %s957_s22 = scalar_lea.hbm %s1402_s12, 128  ;;  %s961_s23 = scalar_lea.hbm %s1466_s4, 256 }
 0x218   : > { %p958_p7 = scmp.ne.s32.totalorder %s1402_s12, %s957_s22  ;;  %p962_p8 = scmp.lt.u32.totalorder %s1402_s12, %s1466_s4 }
 0x219   : > { %p963_p10 = scmp.lt.u32.totalorder %s961_s23, %s957_s22  ;;  %p965_p9 = scmp.lt.u32.totalorder %s957_s22, %s1402_s12 }
 0x21a   : > { %p959_p13 = pnand %p958_p7, %p1504_p2 }
 0x21b   : > { %p964_p11 = por %p963_p10, %p962_p8 }
 0x21c   : > { %p960_p12 = pneg %p959_p13 }
 0x21d   : > { %p966_p1 = por %p965_p9, %p964_p11 }
 0x21f   : > { %p967_p6 = pnand %p966_p1, %p960_p12 }
 0x221   : > { %970 = shalt.err (!%p967_p6)
}
 0x222   : > { %700 = dma.vmem_to_hbm [thread:$0]  (%p1504_p2), %s506_s24, 128, %s1402_s12, %s492_s15  }
 0x223 PF: > { %s1505_s1 = sld [smem:[#allocation16_spill]]  ;;  %s1506_s26 = sld [smem:[#allocation25_spill]] }
 0x224   : > { %p720_p0 = scmp.ge.s32.totalorder %s1073_s25, 2 }
 0x229   : > { %s517_s17 = sand.u32 1, %s1505_s1   ;;  %p1507_p5 = scmp.ne.s32.totalorder %s1506_s26, 0 }
 0x22a   : > { %s518_s7 = scalar_lea.sflag [#allocation5], %s517_s17 }
 0x22b   : > { %p716_p4 = pnand %p720_p0, %p1507_p5 }
 0x22d   : > { %1028 = dma.done.wait (!%p716_p4), %s518_s7, 128  }
 0x22e   : > { %1030 = vsyncadd (!%p716_p4), %s518_s7, 4294967168  ;;  %s26_s25 = sadd.s32 1, %s1073_s25   ;;  %s1508_s11 = sld [smem:[#allocation17_spill]] }
 0x22f   : > { %p23_p3 = scmp.ge.s32.totalorder %s26_s25, 6   ;;  %s1509_s17 = sld [smem:[#allocation23_spill]] }
 0x230   : > { %s1510_s30 = sld [smem:[#allocation18_spill]]  ;;  %s1511_s20 = sld [smem:[#allocation24_spill]] }
 0x231   : > { %s1512_s21 = sld [smem:[#allocation19_spill]]  ;;  %s1513_s22 = sld [smem:[#allocation20_spill]] }
 0x232   : > { %s1514_s23 = sld [smem:[#allocation21_spill]]  ;;  %s1515_s24 = sld [smem:[#allocation22_spill]] }
 0x233   : > { %s1516_s15 = smov %s1037_s16  ;;  %s1518_s18 = smov %s1049_s19 }
 0x234   : > { %s1517_s16 = smov %s1508_s11  ;;  %25 = sbr.rel (!%p23_p3) target bundleno = 15 (0xf), region = 126 }
 0x236   : > { %s1519_s19 = smov %s1510_s30 }
 0x23b   :  { %523 = vsyncpa [#allocation4], 1 }
 0x23c   :  { %525 = vsyncpa [#allocation4 + $0x1], 1 }
 0x23d   :  { %526 = vsyncpa [#allocation7], 1 }
 0x23e   :  { %528 = vsyncpa [#allocation7 + $0x1], 1 }
 0x23f   :  { %529 = vsyncpa [#allocation10], 1 }
 0x240   :  { %531 = vsyncpa [#allocation10 + $0x1], 1 }
 0x241   :  { %532 = vsyncpa [#allocation5], 1 }
 0x242   :  { %534 = vsyncpa [#allocation5 + $0x1], 1 }

</bundles_post_ra>
